<compile_context>
chip_gen: v6e
topology: v6e:2x2x1
jax: 0.10.0
libtpu: 0.0.40
codegen_flags: <defaults>
</compile_context>

<pallas_src>
import functools

import jax
import jax.numpy as jnp
from jax.experimental import pallas as pl
from jax.experimental.pallas import tpu as pltpu


def _layernorm_kernel(x_ref, scale_ref, bias_ref, o_ref, *, eps, inv_d):
    # x_ref: (tm, D) row tile.  scale_ref / bias_ref: (1, D) f32, resident.
    x = x_ref[...].astype(jnp.float32)

    # Two-pass-within-tile statistics (x already resident in VMEM): matches
    # PyTorch's mean / var(unbiased=False) numerics without cancellation.
    mean = jnp.sum(x, axis=-1, keepdims=True) * inv_d
    centered = x - mean
    var = jnp.sum(centered * centered, axis=-1, keepdims=True) * inv_d

    inv_std = jax.lax.rsqrt(var + eps)  # EUP slot -> essentially free
    out = centered * inv_std * scale_ref[...] + bias_ref[...]
    o_ref[...] = out.astype(o_ref.dtype)  # store in input dtype


def _sublane_multiple(dtype) -> int:
    # Second-minor packing multiple: 8 for 4-byte, 16 for 2-byte, 32 for 1-byte.
    return max(8, 32 // jnp.dtype(dtype).itemsize)


def _round_up(n: int, m: int) -> int:
    return ((n + m - 1) // m) * m


_TILE_BYTES_TARGET = 1 << 20      # ~1 MiB input tile: 0.5-2 MiB sweet spot
_MIN_GRID_STEPS = 16              # >= 8 steps per TC on v7x's 2 TensorCores
_VMEM_LIMIT_BYTES = 40 << 20      # modest: fine on v7x (64 MiB) and v5e/v6e
_MAX_BLOCK_FOOTPRINT = 24 << 20   # Pallas-path eligibility check (huge D)


def _pick_row_tile(rows: int, d: int, dtype) -> int:
    """Row tile: multiple of the sublane packing, ~1 MiB of input, and (when
    rows allow) small enough to leave >= _MIN_GRID_STEPS grid steps."""
    sub = _sublane_multiple(dtype)
    bytes_per_row = d * jnp.dtype(dtype).itemsize
    tm_cap = max(sub, _TILE_BYTES_TARGET // max(1, bytes_per_row))
    if rows >= _MIN_GRID_STEPS * sub:
        tm_cap = min(tm_cap, max(sub, rows // _MIN_GRID_STEPS))
    tm = max(sub, (tm_cap // sub) * sub)
    tm = min(tm, _round_up(rows, sub))
    return tm


def _block_footprint_bytes(tm: int, d: int, dtype) -> int:
    # Honest model: double-buffered in + out tiles, plus the in-kernel f32
    # temporaries (upcast x, centered, f32 result), plus resident params.
    io = 4 * tm * d * jnp.dtype(dtype).itemsize
    f32_work = 3 * tm * d * 4
    params = 2 * d * 4
    return io + f32_work + params


def _layer_norm_xla(x, scale, bias, eps):
    xf = x.astype(jnp.float32)
    mean = jnp.mean(xf, axis=-1, keepdims=True)
    var = jnp.mean((xf - mean) ** 2, axis=-1, keepdims=True)
    xn = (xf - mean) * jax.lax.rsqrt(var + eps)
    out = scale.astype(jnp.float32) * xn + bias.astype(jnp.float32)
    return out.astype(x.dtype)


def layer_norm(x, scale, bias, *, eps=1e-5):
    """x: (..., D); scale, bias: (D,). Returns same shape/dtype as x."""
    orig_shape = x.shape
    d = orig_shape[-1]
    rows = 1
    for s in orig_shape[:-1]:
        rows *= s

    # Lane-dense / footprint guard: ragged D (masked partial stores, binding
    # on v5e's single store slot) or D too large for even an 8-row block goes
    # to plain XLA, which wins there anyway.
    # TODO(synk): D-split 2D-grid path (sum/sumsq accumulators across a D axis
    # with pl.when init/finalize) for very large D instead of the XLA fallback.
    if (rows == 0 or d % 128 != 0 or
            _block_footprint_bytes(_sublane_multiple(x.dtype), d, x.dtype)
            > _MAX_BLOCK_FOOTPRINT):
        return _layer_norm_xla(x, scale, bias, eps)

    tm = _pick_row_tile(rows, d, x.dtype)

    x2 = x.reshape(rows, d)
    padded_rows = _round_up(rows, tm)
    if padded_rows != rows:
        # cdiv-style grid via zero padding; padded rows produce finite junk
        # (mean 0, var 0 -> rsqrt(eps)) that is sliced off below.
        x2 = jnp.pad(x2, ((0, padded_rows - rows), (0, 0)))

    # Params cast to f32 once here (not per grid step); constant index_map
    # keeps their (1, D) blocks resident in VMEM across the whole grid.
    scale2 = scale.reshape(1, d).astype(jnp.float32)
    bias2 = bias.reshape(1, d).astype(jnp.float32)

    kernel = functools.partial(_layernorm_kernel, eps=eps, inv_d=1.0 / d)

    # NOTE: if a v7x profile shows exposed input DMA, add
    # pipeline_mode=pl.Buffered(3) to the x BlockSpec (one extra ~1 MiB buffer).
    out = pl.pallas_call(
        kernel,
        out_shape=jax.ShapeDtypeStruct((padded_rows, d), x.dtype),
        grid_spec=pltpu.PrefetchScalarGridSpec(
            num_scalar_prefetch=0,
            grid=(padded_rows // tm,),
            in_specs=[
                pl.BlockSpec((tm, d), lambda i: (i, 0)),
                pl.BlockSpec((1, d), lambda i: (0, 0)),
                pl.BlockSpec((1, d), lambda i: (0, 0)),
            ],
            out_specs=pl.BlockSpec((tm, d), lambda i: (i, 0)),
        ),
        compiler_params=pltpu.CompilerParams(
            dimension_semantics=("parallel",),
            vmem_limit_bytes=_VMEM_LIMIT_BYTES,
        ),
    )(x2, scale2, bias2)

    if padded_rows != rows:
        out = out[:rows]
    return out.reshape(orig_shape)


if __name__ == "__main__":
    key = jax.random.PRNGKey(0)
    # Small demo shape; hidden=256 keeps the Pallas path (D % 128 == 0).
    batch, seq, hidden = 2, 8, 256

    # +3.0 offset gives a nonzero mean, exercising the centering path.
    x = jax.random.normal(key, (batch, seq, hidden), dtype=jnp.float32) + 3.0
    # Deterministic parameter init matching nn.Parameter(torch.ones/zeros).
    scale = jnp.ones((hidden,), dtype=jnp.float32)
    bias = jnp.zeros((hidden,), dtype=jnp.float32)

    out = jax.block_until_ready(layer_norm(x, scale, bias))
    ref = _layer_norm_xla(x, scale, bias, 1e-5)
    assert out.shape == x.shape and out.dtype == x.dtype
    assert jnp.allclose(out, ref, atol=1e-5, rtol=1e-5), "mismatch vs reference"

    # Ragged row count exercises the padded-rows / cdiv grid path.
    x2 = jax.random.normal(jax.random.PRNGKey(1), (3, 7, hidden), dtype=jnp.float32)
    out2 = jax.block_until_ready(layer_norm(x2, scale, bias))
    ref2 = _layer_norm_xla(x2, scale, bias, 1e-5)
    assert out2.shape == x2.shape
    assert jnp.allclose(out2, ref2, atol=1e-5, rtol=1e-5), "mismatch (padded rows)"

    print("KERNEL_OK")
</pallas_src>

<mosaic_0001>
module attributes {stable_mosaic.version = 11 : i64} {
  func.func @_layernorm_kernel(%arg0: i32, %arg1: memref<16x256xf32, #tpu.memory_space<vmem>>, %arg2: memref<1x256xf32, #tpu.memory_space<vmem>>, %arg3: memref<1x256xf32, #tpu.memory_space<vmem>>, %arg4: memref<16x256xf32, #tpu.memory_space<vmem>>) attributes {dimension_semantics = [#tpu.dimension_semantics<parallel>], iteration_bounds = array<i64: 1>, scalar_prefetch = 0 : i64, scratch_operands = 0 : i64, tpu.core_type = #tpu.core_type<tc>, window_params = [{transform_indices = @transform_0, window_bounds = array<i64: 16, 256>}, {pipeline_mode = #tpu.pipeline_mode<synchronous>, transform_indices = @transform_1, window_bounds = array<i64: 1, 256>}, {pipeline_mode = #tpu.pipeline_mode<synchronous>, transform_indices = @transform_2, window_bounds = array<i64: 1, 256>}, {transform_indices = @transform_3, window_bounds = array<i64: 16, 256>}]} {
    %c0 = arith.constant 0 : index
    %c0_0 = arith.constant 0 : index
    %0 = vector.load %arg1[%c0, %c0_0] : memref<16x256xf32, #tpu.memory_space<vmem>>, vector<16x256xf32>
    %cst = arith.constant dense<0.000000e+00> : vector<16xf32>
    %1 = vector.multi_reduction <add>, %0, %cst [1] : vector<16x256xf32> to vector<16xf32>
    %2 = vector.shape_cast %1 : vector<16xf32> to vector<16x1xf32>
    %cst_1 = arith.constant 3.906250e-03 : f32
    %3 = vector.broadcast %cst_1 : f32 to vector<16x1xf32>
    %4 = arith.mulf %2, %3 : vector<16x1xf32>
    %5 = vector.broadcast %4 : vector<16x1xf32> to vector<16x256xf32>
    %6 = arith.subf %0, %5 : vector<16x256xf32>
    %7 = arith.mulf %6, %6 : vector<16x256xf32>
    %cst_2 = arith.constant dense<0.000000e+00> : vector<16xf32>
    %8 = vector.multi_reduction <add>, %7, %cst_2 [1] : vector<16x256xf32> to vector<16xf32>
    %9 = vector.shape_cast %8 : vector<16xf32> to vector<16x1xf32>
    %cst_3 = arith.constant 3.906250e-03 : f32
    %10 = vector.broadcast %cst_3 : f32 to vector<16x1xf32>
    %11 = arith.mulf %9, %10 : vector<16x1xf32>
    %cst_4 = arith.constant 9.99999974E-6 : f32
    %12 = vector.broadcast %cst_4 : f32 to vector<16x1xf32>
    %13 = arith.addf %11, %12 : vector<16x1xf32>
    %14 = math.rsqrt %13 : vector<16x1xf32>
    %15 = vector.broadcast %14 : vector<16x1xf32> to vector<16x256xf32>
    %16 = arith.mulf %6, %15 : vector<16x256xf32>
    %c0_5 = arith.constant 0 : index
    %c0_6 = arith.constant 0 : index
    %17 = vector.load %arg2[%c0_5, %c0_6] : memref<1x256xf32, #tpu.memory_space<vmem>>, vector<1x256xf32>
    %18 = vector.broadcast %17 : vector<1x256xf32> to vector<16x256xf32>
    %19 = arith.mulf %16, %18 : vector<16x256xf32>
    %c0_7 = arith.constant 0 : index
    %c0_8 = arith.constant 0 : index
    %20 = vector.load %arg3[%c0_7, %c0_8] : memref<1x256xf32, #tpu.memory_space<vmem>>, vector<1x256xf32>
    %21 = vector.broadcast %20 : vector<1x256xf32> to vector<16x256xf32>
    %22 = arith.addf %19, %21 : vector<16x256xf32>
    %c0_9 = arith.constant 0 : index
    %c0_10 = arith.constant 0 : index
    %23 = vector.load %arg4[%c0_9, %c0_10] : memref<16x256xf32, #tpu.memory_space<vmem>>, vector<16x256xf32>
    tpu.vector_store %arg4[%c0_9, %c0_10], %22 {strides = array<i32>} : memref<16x256xf32, #tpu.memory_space<vmem>>, vector<16x256xf32>,
    return
  }
  func.func @transform_0(%arg0: i32) -> (i32, i32) {
    %c0_i32 = arith.constant 0 : i32
    %c0_i32_0 = arith.constant 0 : i32
    return %arg0, %c0_i32 : i32, i32
  }
  func.func @transform_1(%arg0: i32) -> (i32, i32) {
    %c0_i32 = arith.constant 0 : i32
    %c0_i32_0 = arith.constant 0 : i32
    %c0_i32_1 = arith.constant 0 : i32
    return %c0_i32, %c0_i32_0 : i32, i32
  }
  func.func @transform_2(%arg0: i32) -> (i32, i32) {
    %c0_i32 = arith.constant 0 : i32
    %c0_i32_0 = arith.constant 0 : i32
    %c0_i32_1 = arith.constant 0 : i32
    return %c0_i32, %c0_i32_0 : i32, i32
  }
  func.func @transform_3(%arg0: i32) -> (i32, i32) {
    %c0_i32 = arith.constant 0 : i32
    %c0_i32_0 = arith.constant 0 : i32
    return %arg0, %c0_i32 : i32, i32
  }
}

</mosaic_0001>

<bundles_post_ra>
// kernel: tpu_custom_call.1
= control target key start
LH: loop header
LB: loop body
LE: loop exit
PB: predicated region body
PF: predicated region fallthrough
CT: control target
= control target key end

     0   :  { %8 = vsyncpa [#allocation3], 0  ;;  %s249_s0 = inlined_call_operand.hbm [shape: f32[16,256], index: 0, kind: input, shape index: {}]   ;;  %s250_s1 = inlined_call_operand.hbm [shape: f32[1,256], index: 1, kind: input, shape index: {}]   ;;  %s251_s2 = inlined_call_operand.vmem [shape: f32[1,256], index: 2, kind: input, shape index: {}]   ;;  %s252_s3 = inlined_call_operand.hbm [shape: f32[16,256], index: 3, kind: output, shape index: {}]  }
   0x1   :  { %9 = vsyncpa [#allocation6], 0 }
   0x2   :  { %10 = vsyncpa [#allocation4], 0  ;;  %s206_s12 = smov [#allocation2]  }
   0x3   :  { %s16_s13 = sshll.u32 %s206_s12, 4  ;;  %s17_s13 = int_to_ptr.vmem [resolvable:$true] %s16_s13 }
   0x4   :  { %s148_s14 = scalar_lea.vmem %s17_s13, 512  ;;  %p153_p1 = scmp.lt.s32.totalorder %s17_s13, %s17_s13 }
   0x5   :  { %p149_p0 = scmp.ne.s32.totalorder %s17_s13, %s148_s14  ;;  %p154_p2 = scmp.lt.s32.totalorder %s148_s14, %s148_s14 }
   0x7   :  { %p155_p3 = por %p154_p2, %p153_p1 }
   0x9   :  { %p156_p4 = pnand %p155_p3, %p149_p0 }
   0xb   :  { %159 = shalt.err (!%p156_p4)
}
   0xc   :  { %s207_s15 = smov 256   ;;  %s208_s16 = smov 16  }
   0xd   :  { %22 = dma.hbm_to_vmem [thread:$0]  %s249_s0, 512, %s17_s13, [#allocation3], %s207_s15, %s207_s15, %s208_s16  }
   0xe   :  { %s209_s19 = smov [#allocation5]  }
   0xf   :  { %s29_s20 = sshll.u32 %s209_s19, 4  ;;  %s30_s20 = int_to_ptr.vmem [resolvable:$true] %s29_s20 }
  0x10   :  { %s168_s21 = scalar_lea.vmem %s30_s20, 32  ;;  %p173_p6 = scmp.lt.s32.totalorder %s30_s20, %s30_s20 }
  0x11   :  { %p169_p5 = scmp.ne.s32.totalorder %s30_s20, %s168_s21  ;;  %p174_p7 = scmp.lt.s32.totalorder %s168_s21, %s168_s21 }
  0x13   :  { %p175_p8 = por %p174_p7, %p173_p6 }
  0x15   :  { %p176_p9 = pnand %p175_p8, %p169_p5 }
  0x17   :  { %179 = shalt.err (!%p176_p9)
}
  0x18   :  { %32 = dma.hbm_to_vmem [thread:$0]  %s250_s1, 32, %s30_s20, [#allocation6]  }
  0x19   :  { %200 = dma.done.wait [#allocation3], 512  }
  0x1a   :  { %201 = vsyncadd [#allocation3], 4294966784 }
  0x1b   :  { %202 = dma.done.wait [#allocation6], 32  }
  0x1c   :  { %203 = vsyncadd [#allocation6], 4294967264  ;;  %v41_v0 = vld [vmem:[#allocation2] sm:$0xff]  ;;  %v42_v1 = vld [vmem:[#allocation2 + $0x8] sm:$0xff]  ;;  %v79_v25 = vlaneseq  ;;  %s210_s24 = smov [#allocation7]  }
  0x1d   :  { %v43_v2 = vld [vmem:[#allocation2 + $0x10] sm:$0xff]  ;;  %v45_v3 = vadd.f32 %v42_v1, %v41_v0  ;;  %v44_v4 = vld [vmem:[#allocation2 + $0x18] sm:$0xff]  ;;  %v77_v30 = vld [vmem:[#allocation5] sm:$0x3]  ;;  %s118_s25 = sshll.u32 %s210_s24, 4  ;;  %s119_s25 = int_to_ptr.vmem [resolvable:$true] %s118_s25 }
  0x1e   :  { %v48_v5 = vadd.f32 %v44_v4, %v43_v2  ;;  %v80_v27 = vshrl.u32 %v79_v25, 7  ;;  %v93_v31 = vld [vmem:[%s251_s2] sm:$0x3]  ;;  %s180_s2 = scalar_lea.vmem %s119_s25, 512  ;;  %p185_p11 = scmp.lt.s32.totalorder %s119_s25, %s119_s25 }
  0x1f   :  { %46 = vadd.xlane.f32.xlu0 %v45_v3  ;;  %p181_p10 = scmp.ne.s32.totalorder %s119_s25, %s180_s2  ;;  %p186_p12 = scmp.lt.s32.totalorder %s180_s2, %s180_s2 }
  0x20   :  { %v81_v28 = vsub.s32 0, %v80_v27  ;;  %v85_v29 = vsub.s32 1, %v80_v27 }
  0x21   :  { %p187_p13 = por %p186_p12, %p185_p11 }
  0x22   :  { %v82_v32 = vrot.slane %v77_v30, %v81_v28  ;;  %v86_v33 = vrot.slane %v77_v30, %v85_v29  ;;  %v98_v37 = vrot.slane %v93_v31, %v81_v28  ;;  %v102_v38 = vrot.slane %v93_v31, %v85_v29 }
  0x23   :  { %49 = vadd.xlane.f32.xlu0 %v48_v5  ;;  %p188_p0 = pnand %p187_p13, %p181_p10 }
  0xa8   :  { %v47_v6 = vpop.xlane.xlu0 %46 }
  0xa9   :  { %v51_v7 = vmul.f32 0.00390625, %v47_v6 }
  0xab   :  { %v53_v8 = vsub.f32 %v41_v0, %v51_v7  ;;  %v54_v9 = vsub.f32 %v42_v1, %v51_v7 }
  0xac   :  { %v50_v10 = vpop.xlane.xlu0 %49 }
  0xad   :  { %v52_v11 = vmul.f32 0.00390625, %v50_v10  ;;  %v57_v12 = vmul.f32 %v53_v8, %v53_v8  ;;  %v58_v13 = vmul.f32 %v54_v9, %v54_v9 }
  0xaf   :  { %v55_v14 = vsub.f32 %v43_v2, %v52_v11  ;;  %v56_v15 = vsub.f32 %v44_v4, %v52_v11  ;;  %v61_v16 = vadd.f32 %v58_v13, %v57_v12 }
  0xb1   :  { %62 = vadd.xlane.f32.xlu1 %v61_v16  ;;  %v59_v17 = vmul.f32 %v55_v14, %v55_v14  ;;  %v60_v18 = vmul.f32 %v56_v15, %v56_v15 }
  0xb3   :  { %v64_v19 = vadd.f32 %v60_v18, %v59_v17 }
  0xb5   :  { %65 = vadd.xlane.f32.xlu1 %v64_v19 }
 0x13a   :  { %v63_v20 = vpop.xlane.xlu1 %62 }
 0x13b   :  { %v67_v21 = vmul.f32 0.00390625, %v63_v20 }
 0x13d   :  { %v69_v22 = vadd.f32 1e-05, %v67_v21 }
 0x13e   :  { %v66_v23 = vpop.xlane.xlu1 %65 }
 0x13f   :  { %136 = vrsqrt.f32 %v69_v22  ;;  %v68_v24 = vmul.f32 0.00390625, %v66_v23 }
 0x141   :  { %v70_v26 = vadd.f32 1e-05, %v68_v24 }
 0x143   :  { %138 = vrsqrt.f32 %v70_v26 }
 0x14c   :  { %v137_v34 = vpop.eup %136 }
 0x14d   :  { %v73_v35 = vmul.f32 %v137_v34, %v53_v8  ;;  %v74_v36 = vmul.f32 %v137_v34, %v54_v9 }
 0x14f   :  { %v89_v39 = vmul.f32 %v82_v32, %v73_v35  ;;  %v90_v40 = vmul.f32 %v86_v33, %v74_v36 }
 0x150   :  { %v139_v41 = vpop.eup %138 }
 0x151   :  { %v75_v42 = vmul.f32 %v139_v41, %v55_v14  ;;  %v76_v43 = vmul.f32 %v139_v41, %v56_v15  ;;  %v105_v44 = vadd.f32 %v98_v37, %v89_v39  ;;  %v106_v45 = vadd.f32 %v102_v38, %v90_v40 }
 0x153   :  { %v91_v46 = vmul.f32 %v82_v32, %v75_v42  ;;  %v92_v47 = vmul.f32 %v86_v33, %v76_v43  ;;  %109 = vst [vmem:[#allocation7] sm:$0xff] %v105_v44  ;;  %110 = vst [vmem:[#allocation7 + $0x8] sm:$0xff] %v106_v45 }
 0x155   :  { %v107_v48 = vadd.f32 %v98_v37, %v91_v46  ;;  %v108_v49 = vadd.f32 %v102_v38, %v92_v47 }
 0x157   :  { %111 = vst [vmem:[#allocation7 + $0x10] sm:$0xff] %v107_v48  ;;  %112 = vst [vmem:[#allocation7 + $0x18] sm:$0xff] %v108_v49 }
 0x158   :  { %191 = shalt.err (!%p188_p0)
}
 0x159   :  { %124 = dma.vmem_to_hbm [thread:$0]  %s119_s25, 512, %s252_s3, [#allocation4], %s207_s15, %s207_s15, %s208_s16  }
 0x15a   :  { %204 = dma.done.wait [#allocation4], 512  }
 0x15b   :  { %205 = vsyncadd [#allocation4], 4294966784 }
 0x15c   :  { %128 = vsyncpa [#allocation3], 1 }
 0x15d   :  { %129 = vsyncpa [#allocation6], 1 }
 0x15e   :  { %130 = vsyncpa [#allocation4], 1 }

</bundles_post_ra>
